<compile_context>
chip_gen: v5e
topology: v5e:2x2
jax: 0.10.0
libtpu: 0.0.40
codegen_flags: <defaults>
</compile_context>

<pallas_src>
import functools
import math

import jax
import jax.numpy as jnp
from jax.experimental import pallas as pl
from jax.experimental.pallas import tpu as pltpu


def _rmsnorm_kernel(x_ref, w_ref, o_ref, *, eps, inv_d):
    # x_ref: (TR, D) tile of rows; w_ref: (1, D) scale; o_ref: (TR, D).
    # NOTE: the last grid step may be a ragged block; its out-of-bounds rows
    # contain garbage, but the reduction below is strictly per-row (no
    # cross-row ops) and the out-of-bounds writeback is masked by Pallas,
    # so valid rows are unaffected.  Keep it per-row.
    xf = x_ref[...].astype(jnp.float32)
    ssq = jnp.sum(xf * xf, axis=-1, keepdims=True)
    inv = jax.lax.rsqrt(ssq * inv_d + eps)  # mean folded into rsqrt arg (EUP)
    o_ref[...] = (xf * inv * w_ref[...].astype(jnp.float32)).astype(o_ref.dtype)


def _sublane_multiple(dtype) -> int:
    # f32 -> 8, bf16 -> 16, int8/fp8 -> 32
    itemsize = jnp.dtype(dtype).itemsize
    return max(8, 32 // itemsize)


def _vmem_budget_bytes() -> int:
    # ~75% of the TensorCore's VMEM capacity (≈48 MiB on v7x, ≈96 MiB on
    # v5e/v6e).  Fallback assumes the smallest (v7x-sized) VMEM.
    try:
        cap = int(pltpu.get_tpu_info().vmem_capacity_bytes)
    except Exception:
        cap = 64 << 20
    return max(16 << 20, (cap * 3) // 4)


def _max_tile_rows(d, dtype, budget) -> int:
    itemsize = jnp.dtype(dtype).itemsize
    sub = _sublane_multiple(dtype)
    d_lane = ((d + 127) // 128) * 128  # VMEM tiles are lane-padded internally
    # 2x double-buffered input + 2x double-buffered output tiles (native
    # dtype) + ~1 f32-wide temp live inside the body.
    bytes_per_row = d_lane * (4 * itemsize + 4)
    return max(sub, ((budget // max(1, bytes_per_row)) // sub) * sub)


def _pick_tile_rows(rows, d, dtype, budget) -> int:
    sub = _sublane_multiple(dtype)
    tr = min(1024, _max_tile_rows(d, dtype, budget))
    tr = max(sub, (tr // sub) * sub)
    # Aim for >= 4 grid steps (>= 2 per TensorCore on v7x megacore) when the
    # row count allows it; harmless on single-core v5e/v6e.
    if rows >= 4 * sub:
        tr = min(tr, max(sub, (pl.cdiv(rows, 4) // sub) * sub))
    # Never larger than needed to cover all rows (rounded up to a sublane).
    tr = min(tr, ((rows + sub - 1) // sub) * sub)
    return max(sub, (tr // sub) * sub)


def rmsnorm(x, weight, eps=1e-5, *, tile_rows=None):
    """Pallas RMSNorm over the last axis of x.

    x:      (..., emb_dim)
    weight: (emb_dim,)
    """
    orig_shape = x.shape
    d = orig_shape[-1]
    rows = math.prod(orig_shape[:-1]) if len(orig_shape) > 1 else 1

    itemsize = jnp.dtype(x.dtype).itemsize
    sub = _sublane_multiple(x.dtype)
    budget = _vmem_budget_bytes()

    if tile_rows is None:
        tr = _pick_tile_rows(rows, d, x.dtype, budget)
    else:
        tr = max(sub, (int(tile_rows) // sub) * sub)
        tr = min(tr, _max_tile_rows(d, x.dtype, budget))  # clamp to VMEM budget

    grid = (pl.cdiv(rows, tr),)

    # No padding: ragged last block handled by Pallas (masked edge writeback);
    # lane dim uses a full-extent block so any emb_dim is legal.
    x2d = x.reshape(rows, d)
    w2d = weight.reshape(1, d)

    d_lane = ((d + 127) // 128) * 128
    tile_bytes = tr * d_lane * itemsize
    f32_tile_bytes = tr * d_lane * 4
    w_bytes = 2 * d_lane * jnp.dtype(weight.dtype).itemsize
    vmem_limit = int(4 * tile_bytes + f32_tile_bytes + w_bytes + (4 << 20))
    vmem_limit = max(16 << 20, min(vmem_limit, budget))

    cost = pl.CostEstimate(
        flops=int(3 * rows * d),
        transcendentals=int(rows),
        bytes_accessed=int(
            2 * rows * d * itemsize + d * jnp.dtype(weight.dtype).itemsize
        ),
    )

    kernel = functools.partial(_rmsnorm_kernel, eps=float(eps), inv_d=1.0 / float(d))

    out2d = pl.pallas_call(
        kernel,
        out_shape=jax.ShapeDtypeStruct((rows, d), x.dtype),
        grid_spec=pltpu.PrefetchScalarGridSpec(
            num_scalar_prefetch=0,
            grid=grid,
            in_specs=[
                pl.BlockSpec((tr, d), lambda i: (i, 0)),
                pl.BlockSpec((1, d), lambda i: (0, 0)),
            ],
            out_specs=pl.BlockSpec((tr, d), lambda i: (i, 0)),
        ),
        compiler_params=pltpu.CompilerParams(
            dimension_semantics=("parallel",),
            vmem_limit_bytes=vmem_limit,
        ),
        cost_estimate=cost,
    )(x2d, w2d)

    return out2d.reshape(orig_shape)


def rmsnorm_ref(x, weight, eps=1e-5):
    xf = x.astype(jnp.float32)
    rms_mean = jnp.mean(xf * xf, axis=-1, keepdims=True)
    x_norm = xf * jax.lax.rsqrt(rms_mean + eps)
    return (x_norm * weight.astype(jnp.float32)).astype(x.dtype)


if __name__ == "__main__":
    key = jax.random.PRNGKey(0)

    # Primary test: matches the module's small toy shape (f32).
    batch, seq, emb_dim = 2, 8, 32
    x = jax.random.normal(key, (batch, seq, emb_dim), dtype=jnp.float32)
    weight = jnp.ones((emb_dim,), dtype=jnp.float32)  # nn.Parameter(torch.ones(emb_dim))

    out = jax.block_until_ready(rmsnorm(x, weight, eps=1e-5))
    ref = rmsnorm_ref(x, weight, eps=1e-5)
    assert out.shape == x.shape
    assert out.dtype == x.dtype
    assert jnp.allclose(out, ref, atol=1e-5, rtol=1e-5)

    # Second test: non-aligned rows/emb_dim (ragged edge block + masked lanes).
    key2 = jax.random.PRNGKey(1)
    x2 = jax.random.normal(key2, (3, 5, 48), dtype=jnp.float32)
    w2 = jnp.ones((48,), dtype=jnp.float32)
    out2 = jax.block_until_ready(rmsnorm(x2, w2, eps=1e-5))
    ref2 = rmsnorm_ref(x2, w2, eps=1e-5)
    assert out2.shape == x2.shape
    assert jnp.allclose(out2, ref2, atol=1e-5, rtol=1e-5)

    # Third test: bf16 activations (16-row sublane packing path).
    x3 = jax.random.normal(key, (batch, seq, emb_dim), dtype=jnp.bfloat16)
    out3 = jax.block_until_ready(rmsnorm(x3, weight, eps=1e-5))
    ref3 = rmsnorm_ref(x3, weight, eps=1e-5)
    assert out3.dtype == jnp.bfloat16
    assert jnp.allclose(
        out3.astype(jnp.float32), ref3.astype(jnp.float32), atol=2e-2, rtol=2e-2
    )

    # Fourth test: multi-step grid with a ragged last row-block (rows=400,
    # tile chosen by the >=4-steps heuristic), lane-aligned d=256.
    key3 = jax.random.PRNGKey(2)
    x4 = jax.random.normal(key3, (4, 100, 256), dtype=jnp.float32)
    w4 = jax.random.normal(jax.random.PRNGKey(3), (256,), dtype=jnp.float32)
    out4 = jax.block_until_ready(rmsnorm(x4, w4, eps=1e-5))
    ref4 = rmsnorm_ref(x4, w4, eps=1e-5)
    assert out4.shape == x4.shape
    assert jnp.allclose(out4, ref4, atol=1e-5, rtol=1e-5)

    print("KERNEL_OK")
</pallas_src>

<mosaic_0001>
module attributes {stable_mosaic.version = 11 : i64} {
  func.func @_rmsnorm_kernel(%arg0: i32, %arg1: memref<16x32xf32, #tpu.memory_space<vmem>>, %arg2: memref<1x32xf32, #tpu.memory_space<vmem>>, %arg3: memref<16x32xf32, #tpu.memory_space<vmem>>) attributes {dimension_semantics = [#tpu.dimension_semantics<parallel>], iteration_bounds = array<i64: 1>, scalar_prefetch = 0 : i64, scratch_operands = 0 : i64, tpu.core_type = #tpu.core_type<tc>, window_params = [{transform_indices = @transform_0, window_bounds = array<i64: 16, 32>}, {pipeline_mode = #tpu.pipeline_mode<synchronous>, transform_indices = @transform_1, window_bounds = array<i64: 1, 32>}, {transform_indices = @transform_2, window_bounds = array<i64: 16, 32>}]} {
    %c0 = arith.constant 0 : index
    %c0_0 = arith.constant 0 : index
    %0 = vector.load %arg1[%c0, %c0_0] : memref<16x32xf32, #tpu.memory_space<vmem>>, vector<16x32xf32>
    %1 = arith.mulf %0, %0 : vector<16x32xf32>
    %cst = arith.constant dense<0.000000e+00> : vector<16xf32>
    %2 = vector.multi_reduction <add>, %1, %cst [1] : vector<16x32xf32> to vector<16xf32>
    %3 = vector.shape_cast %2 : vector<16xf32> to vector<16x1xf32>
    %cst_1 = arith.constant 3.125000e-02 : f32
    %4 = vector.broadcast %cst_1 : f32 to vector<16x1xf32>
    %5 = arith.mulf %3, %4 : vector<16x1xf32>
    %cst_2 = arith.constant 9.99999974E-6 : f32
    %6 = vector.broadcast %cst_2 : f32 to vector<16x1xf32>
    %7 = arith.addf %5, %6 : vector<16x1xf32>
    %8 = math.rsqrt %7 : vector<16x1xf32>
    %9 = vector.broadcast %8 : vector<16x1xf32> to vector<16x32xf32>
    %10 = arith.mulf %0, %9 : vector<16x32xf32>
    %c0_3 = arith.constant 0 : index
    %c0_4 = arith.constant 0 : index
    %11 = vector.load %arg2[%c0_3, %c0_4] : memref<1x32xf32, #tpu.memory_space<vmem>>, vector<1x32xf32>
    %12 = vector.broadcast %11 : vector<1x32xf32> to vector<16x32xf32>
    %13 = arith.mulf %10, %12 : vector<16x32xf32>
    %c0_5 = arith.constant 0 : index
    %c0_6 = arith.constant 0 : index
    %14 = vector.load %arg3[%c0_5, %c0_6] : memref<16x32xf32, #tpu.memory_space<vmem>>, vector<16x32xf32>
    tpu.vector_store %arg3[%c0_5, %c0_6], %13 {strides = array<i32>} : memref<16x32xf32, #tpu.memory_space<vmem>>, vector<16x32xf32>,
    return
  }
  func.func @transform_0(%arg0: i32) -> (i32, i32) {
    %c0_i32 = arith.constant 0 : i32
    %c0_i32_0 = arith.constant 0 : i32
    return %arg0, %c0_i32 : i32, i32
  }
  func.func @transform_1(%arg0: i32) -> (i32, i32) {
    %c0_i32 = arith.constant 0 : i32
    %c0_i32_0 = arith.constant 0 : i32
    %c0_i32_1 = arith.constant 0 : i32
    return %c0_i32, %c0_i32_0 : i32, i32
  }
  func.func @transform_2(%arg0: i32) -> (i32, i32) {
    %c0_i32 = arith.constant 0 : i32
    %c0_i32_0 = arith.constant 0 : i32
    return %arg0, %c0_i32 : i32, i32
  }
}

</mosaic_0001>

<bundles_post_ra>
// kernel: tpu_custom_call.1
= control target key start
LH: loop header
LB: loop body
LE: loop exit
PB: predicated region body
PF: predicated region fallthrough
CT: control target
= control target key end

     0   :  { %7 = vsyncpa [#allocation3], 0  ;;  %s234_s0 = inlined_call_operand.hbm [shape: f32[16,32], index: 0, kind: input, shape index: {}]   ;;  %s235_s1 = inlined_call_operand.hbm [shape: f32[1,32], index: 1, kind: input, shape index: {}]   ;;  %s236_s2 = inlined_call_operand.hbm [shape: f32[16,32], index: 2, kind: output, shape index: {}]  }
   0x1   :  { %8 = vsyncpa [#allocation6], 0 }
   0x2   :  { %9 = vsyncpa [#allocation4], 0  ;;  %s14_s11 = sshll.u32 %s234_s0, 4  ;;  %s195_s12 = smov [#allocation2]   ;;  %s15_s11 = int_to_ptr.hbm [resolvable:$true] %s14_s11 }
   0x3   :  { %s16_s13 = sshll.u32 %s195_s12, 4  ;;  %s28_s16 = sshll.u32 %s235_s1, 4  ;;  %s17_s13 = int_to_ptr.vmem [resolvable:$true] %s16_s13  ;;  %s29_s16 = int_to_ptr.hbm [resolvable:$true] %s28_s16 }
   0x4   :  { %s196_s17 = smov 128   ;;  %s197_s18 = smov 8  }
   0x5   :  { %22 = dma.hbm_to_vmem [thread:$0]  %s15_s11, 256, %s17_s13, [#allocation3], %s196_s17, %s196_s17, %s197_s18  }
   0x6   :  { %s198_s19 = smov [#allocation5]  }
   0x7   :  { %s30_s20 = sshll.u32 %s198_s19, 4  ;;  %s31_s20 = int_to_ptr.vmem [resolvable:$true] %s30_s20 }
   0x8   :  { %33 = dma.hbm_to_vmem [thread:$0]  %s29_s16, 16, %s31_s20, [#allocation6]  }
   0x9   :  { %189 = dma.done.wait [#allocation3], 256  }
   0xa   :  { %190 = vsyncadd [#allocation3], 4294967040 }
   0xb   :  { %191 = dma.done.wait [#allocation6], 16  }
   0xc   :  { %192 = vsyncadd [#allocation6], 4294967280  ;;  %v42_v0 = vld [vmem:[#allocation2] sm:$0xff]  ;;  %vm46_vm0 = vcmask 261120   ;;  %v43_v2 = vld [vmem:[#allocation2 + $0x8] sm:$0xff]  ;;  %s199_s0 = smov [#allocation7]  }
   0xd   :  { %v44_v1 = vmul.f32 %v42_v0, %v42_v0  ;;  %v45_v4 = vmul.f32 %v43_v2, %v43_v2  ;;  %v112_v20 = vld [vmem:[#allocation5] ss:$0 sm:$0xff]  ;;  %s91_s1 = sshll.u32 %s199_s0, 4  ;;  %s93_s23 = sshll.u32 %s236_s2, 4  ;;  %s92_s1 = int_to_ptr.vmem [resolvable:$true] %s91_s1  ;;  %s94_s23 = int_to_ptr.hbm [resolvable:$true] %s93_s23 }
   0xf   :  { %v47_v3 = vsel %vm46_vm0, %v44_v1, 0.0  ;;  %v50_v5 = vsel %vm46_vm0, %v45_v4, 0.0 }
  0x10   :  { %48 = vadd.xlane.f32.xlu0 %v47_v3 }
  0x18   :  { %51 = vadd.xlane.f32.xlu0 %v50_v5 }
  0x83   :  { %v49_v6 = vpop.xlane.xlu0 %48 }
  0x84   :  { %v53_v7 = vmul.f32 0.03125, %v49_v6 }
  0x86   :  { %v55_v8 = vadd.f32 1e-05, %v53_v7 }
  0x88   :  { %113 = vrsqrt.f32 %v55_v8  ;;  %vm63_vm2 = vweird.f32 %v55_v8 }
  0x8b   :  { %v52_v9 = vpop.xlane.xlu0 %51 }
  0x8c   :  { %v54_v10 = vmul.f32 0.03125, %v52_v9 }
  0x8e   :  { %v114_v11 = vpop.eup %113  ;;  %v56_v12 = vadd.f32 1e-05, %v54_v10 }
  0x8f   :  { %v58_v13 = vmul.f32 %v114_v11, %v55_v8  ;;  %vm64_vm1 = vweird.f32 %v114_v11 }
  0x90   :  { %115 = vrsqrt.f32 %v56_v12  ;;  %vm65_vm3 = vmor %vm63_vm2, %vm64_vm1  ;;  %vm73_vm5 = vweird.f32 %v56_v12 }
  0x91   :  { %v59_v14 = vmul.f32 %v114_v11, %v58_v13 }
  0x93   :  { %v60_v15 = vmul.f32 0.5, %v59_v14 }
  0x95   :  { %v61_v16 = vsub.f32 1.5, %v60_v15 }
  0x96   :  { %v116_v17 = vpop.eup %115 }
  0x97   :  { %v62_v18 = vmul.f32 %v114_v11, %v61_v16  ;;  %v68_v19 = vmul.f32 %v116_v17, %v56_v12  ;;  %vm74_vm4 = vweird.f32 %v116_v17 }
  0x98   :  { %vm75_vm6 = vmor %vm73_vm5, %vm74_vm4 }
  0x99   :  { %v66_v21 = vsel %vm65_vm3, %v114_v11, %v62_v18  ;;  %v69_v22 = vmul.f32 %v116_v17, %v68_v19 }
  0x9a   :  { %v77_v23 = vmul.f32 %v66_v21, %v42_v0 }
  0x9b   :  { %v70_v24 = vmul.f32 0.5, %v69_v22 }
  0x9c   :  { %v83_v25 = vmul.f32 %v112_v20, %v77_v23 }
  0x9d   :  { %v71_v26 = vsub.f32 1.5, %v70_v24 }
  0x9e   :  { %85 = vst.msk [vmem:[#allocation7] sm:$0xff] %vm46_vm0, %v83_v25 }
  0x9f   :  { %v72_v27 = vmul.f32 %v116_v17, %v71_v26 }
  0xa1   :  { %v76_v28 = vsel %vm75_vm6, %v116_v17, %v72_v27 }
  0xa2   :  { %v78_v29 = vmul.f32 %v76_v28, %v43_v2 }
  0xa4   :  { %v84_v30 = vmul.f32 %v112_v20, %v78_v29 }
  0xa6   :  { %86 = vst.msk [vmem:[#allocation7 + $0x8] sm:$0xff] %vm46_vm0, %v84_v30 }
  0xa7   :  { %99 = dma.vmem_to_hbm [thread:$0]  %s92_s1, 256, %s94_s23, [#allocation4], %s196_s17, %s196_s17, %s197_s18  }
  0xa8   :  { %193 = dma.done.wait [#allocation4], 256  }
  0xa9   :  { %194 = vsyncadd [#allocation4], 4294967040 }
  0xaa   :  { %104 = vsyncpa [#allocation3], 1 }
  0xab   :  { %105 = vsyncpa [#allocation6], 1 }
  0xac   :  { %106 = vsyncpa [#allocation4], 1 }

</bundles_post_ra>
